<compile_context>
chip_gen: v7x
topology: tpu7x:2x2x1
jax: 0.10.0
libtpu: 0.0.40
codegen_flags: <defaults>
</compile_context>

<pallas_src>
import functools

import jax
import jax.numpy as jnp
from jax import lax
from jax.experimental import pallas as pl
from jax.experimental.pallas import tpu as pltpu


def _lstm_chunk_kernel(xw_ref, whh_ref, h_out_ref, h_scr, c_scr):
    """Runs Tc timesteps of the LSTM recurrence on one batch tile.

    xw_ref  : (Tc, tb, 4H) chunk of precomputed x @ W_ih^T + b, order [i,f,o,g]
    whh_ref : (H, 4H)      W_hh^T (resident, same block every grid step)
    h_out_ref: (tb, H)     final hidden state (written on the last T-chunk)
    h_scr, c_scr: (tb, H)  f32 VMEM scratch, persist across T-chunks
    """
    t_blk = pl.program_id(1)
    Tc = xw_ref.shape[0]
    H = whh_ref.shape[0]

    @pl.when(t_blk == 0)
    def _():
        h_scr[...] = jnp.zeros_like(h_scr)
        c_scr[...] = jnp.zeros_like(c_scr)

    # Loop-invariant recurrent weight (hoisted out of the unrolled steps).
    # TODO(synk): on v5e/v6e, hold W_hh in the MXU across the chunk via
    # pltpu.matmul_push_rhs / matmul_acc_lhs / matmul_pop (jnp.dot re-pushes the
    # RHS every timestep); left as jnp.dot for portability.
    whh = whh_ref[...]

    def step(s, carry):
        h, c = carry
        # Recurrent half of the gate pre-activations; x-half precomputed.
        gates = xw_ref[s].astype(jnp.float32) + jnp.dot(
            h.astype(whh.dtype), whh, preferred_element_type=jnp.float32)  # (tb, 4H)

        # Gate order [i, f, o, g]: one sigmoid over all 4H lanes, g's tanh via
        # tanh(x) = 2*sigmoid(2x) - 1 selected by lane index (no partial-vreg
        # EUP ops at small H).
        lane = lax.broadcasted_iota(jnp.int32, gates.shape, 1)
        is_g = lane >= 3 * H
        sg = jax.nn.sigmoid(jnp.where(is_g, 2.0 * gates, gates))
        act = jnp.where(is_g, 2.0 * sg - 1.0, sg)

        i_g = act[:, 0 * H:1 * H]
        f_g = act[:, 1 * H:2 * H]
        o_g = act[:, 2 * H:3 * H]
        g_g = act[:, 3 * H:4 * H]

        c_new = f_g * c + i_g * g_g
        h_new = o_g * jnp.tanh(c_new)
        return h_new, c_new

    # Unroll only within the chunk (Tc small); the T grid is the outer loop, so
    # register pressure stays bounded for production-scale T.
    h, c = lax.fori_loop(0, Tc, step, (h_scr[...], c_scr[...]), unroll=True)
    h_scr[...] = h
    c_scr[...] = c

    @pl.when(t_blk == pl.num_programs(1) - 1)
    def _():
        h_out_ref[...] = h.astype(h_out_ref.dtype)


def _round_up(x, m):
    return (x + m - 1) // m * m


def _largest_divisor_leq(n, cap):
    cap = max(1, min(n, cap))
    for d in range(cap, 0, -1):
        if n % d == 0:
            return d
    return 1


@functools.partial(jax.jit, static_argnames=("matmul_dtype",))
def lstm_forward(x, w_ih, w_hh, b_ih, b_hh, w_fc, b_fc, *,
                 matmul_dtype=jnp.float32):
    """x: (B, T, I) batch_first.  w_ih: (4H, I), w_hh: (4H, H), biases: (4H,),
    w_fc: (O, H), b_fc: (O,).  Returns (B, O)."""
    B, T, I = x.shape
    H = w_hh.shape[1]
    f32 = jnp.float32

    x = x.astype(f32)
    w_ih = w_ih.astype(f32)
    w_hh = w_hh.astype(f32)
    b = (b_ih + b_hh).astype(f32)

    # Permute gate blocks from PyTorch order [i, f, g, o] -> [i, f, o, g].
    def reorder(w):  # leading axis is 4H
        return jnp.concatenate([w[:2 * H], w[3 * H:], w[2 * H:3 * H]], axis=0)

    w_ih_r = reorder(w_ih)          # (4H, I)
    w_hh_r = reorder(w_hh)          # (4H, H)
    b_r = reorder(b)                # (4H,)

    # Hoisted input projection: one big (T*B, I) @ (I, 4H) matmul + fused bias.
    x_tm = jnp.transpose(x, (1, 0, 2))                                # (T, B, I)
    xw = (x_tm.reshape(T * B, I) @ w_ih_r.T + b_r).reshape(T, B, 4 * H)

    # ---- Tiling ------------------------------------------------------------
    # Batch: pad to the sublane tile (8 for f32, 16 for bf16 operands); tile at
    # 128 rows when the batch is big enough (MXU occupancy, v7x megacore).
    sublane = 16 if matmul_dtype == jnp.bfloat16 else 8
    tb = 128 if B >= 128 else _round_up(B, sublane)
    Bp = _round_up(B, tb)
    nb = Bp // tb
    # Time: stream Tc-step chunks over an 'arbitrary' grid axis; unroll within.
    # Production would size Tc against the VMEM budget (cap unroll at ~4-8).
    Tc = _largest_divisor_leq(T, 4)
    nt = T // Tc

    # Padded batch rows see zero gate pre-activations -> harmless dummy states,
    # sliced off after the kernel.
    xw_p = jnp.pad(xw, ((0, 0), (0, Bp - B), (0, 0))).astype(matmul_dtype)
    whh_t = w_hh_r.T.astype(matmul_dtype)                             # (H, 4H)

    # VMEM budget: 2x double-buffered xw chunk + resident W_hh^T + out + h/c.
    isz = jnp.dtype(matmul_dtype).itemsize
    need = (2 * Tc * tb * 4 * H * isz          # double-buffered input chunk
            + H * 4 * H * isz                  # W_hh^T
            + tb * H * 4                       # h_out block
            + 2 * tb * H * 4)                  # h/c scratch
    vmem_limit = int(min(max(2 * need + (4 << 20), 16 << 20), 48 << 20))

    h_T = pl.pallas_call(
        _lstm_chunk_kernel,
        out_shape=jax.ShapeDtypeStruct((Bp, H), f32),
        grid_spec=pltpu.PrefetchScalarGridSpec(
            num_scalar_prefetch=0,
            grid=(nb, nt),
            in_specs=[
                pl.BlockSpec((Tc, tb, 4 * H), lambda bi, ti: (ti, bi, 0)),
                pl.BlockSpec((H, 4 * H), lambda bi, ti: (0, 0)),
            ],
            out_specs=pl.BlockSpec((tb, H), lambda bi, ti: (bi, 0)),
            scratch_shapes=[pltpu.VMEM((tb, H), f32),
                            pltpu.VMEM((tb, H), f32)],
        ),
        compiler_params=pltpu.CompilerParams(
            dimension_semantics=("parallel", "arbitrary"),
            vmem_limit_bytes=vmem_limit,
        ),
    )(xw_p, whh_t)

    # Final Linear on the last timestep.  O=1 would be a lane-width-1 masked
    # store inside the kernel, so keep it in XLA.
    return h_T[:B] @ w_fc.astype(f32).T + b_fc.astype(f32)


def lstm_reference(x, w_ih, w_hh, b_ih, b_hh, w_fc, b_fc):
    """Pure-JAX reference matching torch.nn.LSTM (batch_first) + Linear."""
    B, T, I = x.shape
    H = w_hh.shape[1]
    h0 = jnp.zeros((B, H), jnp.float32)
    c0 = jnp.zeros((B, H), jnp.float32)

    def step(carry, x_t):
        h, c = carry
        gates = x_t @ w_ih.T + b_ih + h @ w_hh.T + b_hh
        i = jax.nn.sigmoid(gates[:, 0 * H:1 * H])
        f = jax.nn.sigmoid(gates[:, 1 * H:2 * H])
        g = jnp.tanh(gates[:, 2 * H:3 * H])
        o = jax.nn.sigmoid(gates[:, 3 * H:4 * H])
        c = f * c + i * g
        h = o * jnp.tanh(c)
        return (h, c), None

    (h_T, _), _ = lax.scan(step, (h0, c0), jnp.transpose(x, (1, 0, 2)))
    return h_T @ w_fc.T + b_fc


if __name__ == "__main__":
    # Small shapes consistent with the module's forward():
    B, T, I = 2, 8, 16          # batch, seq_len, input_size
    H, O = 32, 1                # hidden_size, output_size (num_layers=1)

    key = jax.random.PRNGKey(0)
    ks = jax.random.split(key, 7)
    scale = 1.0 / jnp.sqrt(jnp.float32(H))   # PyTorch-style uniform init range

    x = jax.random.normal(ks[0], (B, T, I), jnp.float32)
    w_ih = jax.random.uniform(ks[1], (4 * H, I), jnp.float32, -scale, scale)
    w_hh = jax.random.uniform(ks[2], (4 * H, H), jnp.float32, -scale, scale)
    b_ih = jax.random.uniform(ks[3], (4 * H,), jnp.float32, -scale, scale)
    b_hh = jax.random.uniform(ks[4], (4 * H,), jnp.float32, -scale, scale)
    w_fc = jax.random.uniform(ks[5], (O, H), jnp.float32, -scale, scale)
    b_fc = jax.random.uniform(ks[6], (O,), jnp.float32, -scale, scale)

    ref = lstm_reference(x, w_ih, w_hh, b_ih, b_hh, w_fc, b_fc)

    # f32 MXU-operand path: must match the f32 reference tightly.
    out = lstm_forward(x, w_ih, w_hh, b_ih, b_hh, w_fc, b_fc,
                       matmul_dtype=jnp.float32)
    out = jax.block_until_ready(out)
    assert out.shape == (B, O), out.shape
    assert jnp.allclose(out, ref, atol=1e-5, rtol=1e-5), (out, ref)

    # bf16 MXU-operand path (production setting): looser tolerance.
    out_bf16 = lstm_forward(x, w_ih, w_hh, b_ih, b_hh, w_fc, b_fc,
                            matmul_dtype=jnp.bfloat16)
    out_bf16 = jax.block_until_ready(out_bf16)
    assert out_bf16.shape == (B, O), out_bf16.shape
    assert jnp.allclose(out_bf16, ref, atol=5e-2, rtol=5e-2), (out_bf16, ref)

    print("KERNEL_OK")
</pallas_src>

<mosaic_0001>
module attributes {stable_mosaic.version = 11 : i64} {
  func.func @_lstm_chunk_kernel(%arg0: i32, %arg1: i32, %arg2: memref<4x8x128xf32, #tpu.memory_space<vmem>>, %arg3: memref<32x128xf32, #tpu.memory_space<vmem>>, %arg4: memref<8x32xf32, #tpu.memory_space<vmem>>, %arg5: memref<8x32xf32, #tpu.memory_space<vmem>>, %arg6: memref<8x32xf32, #tpu.memory_space<vmem>>) attributes {dimension_semantics = [#tpu.dimension_semantics<parallel>, #tpu.dimension_semantics<arbitrary>], iteration_bounds = array<i64: 1, 2>, scalar_prefetch = 0 : i64, scratch_operands = 2 : i64, tpu.core_type = #tpu.core_type<tc>, window_params = [{transform_indices = @transform_0, window_bounds = array<i64: 4, 8, 128>}, {pipeline_mode = #tpu.pipeline_mode<synchronous>, transform_indices = @transform_1, window_bounds = array<i64: 32, 128>}, {transform_indices = @transform_2, window_bounds = array<i64: 8, 32>}]} {
    %c0_i32 = arith.constant 0 : i32
    %0 = arith.cmpi eq, %arg1, %c0_i32 : i32
    %1 = arith.extui %0 : i1 to i32
    %c0_i32_0 = arith.constant 0 : i32
    %2 = arith.cmpi ne, %1, %c0_i32_0 : i32
    scf.if %2 {
      %cst_43 = arith.constant 0.000000e+00 : f32
      %131 = vector.broadcast %cst_43 : f32 to vector<8x32xf32>
      %c0_44 = arith.constant 0 : index
      %c0_45 = arith.constant 0 : index
      %132 = vector.load %arg5[%c0_44, %c0_45] : memref<8x32xf32, #tpu.memory_space<vmem>>, vector<8x32xf32>
      tpu.vector_store %arg5[%c0_44, %c0_45], %131 {strides = array<i32>} : memref<8x32xf32, #tpu.memory_space<vmem>>, vector<8x32xf32>,
      %cst_46 = arith.constant 0.000000e+00 : f32
      %133 = vector.broadcast %cst_46 : f32 to vector<8x32xf32>
      %c0_47 = arith.constant 0 : index
      %c0_48 = arith.constant 0 : index
      %134 = vector.load %arg6[%c0_47, %c0_48] : memref<8x32xf32, #tpu.memory_space<vmem>>, vector<8x32xf32>
      tpu.vector_store %arg6[%c0_47, %c0_48], %133 {strides = array<i32>} : memref<8x32xf32, #tpu.memory_space<vmem>>, vector<8x32xf32>,
    } else {
    }
    %c0 = arith.constant 0 : index
    %c0_1 = arith.constant 0 : index
    %3 = vector.load %arg3[%c0, %c0_1] : memref<32x128xf32, #tpu.memory_space<vmem>>, vector<32x128xf32>
    %c0_2 = arith.constant 0 : index
    %c0_3 = arith.constant 0 : index
    %4 = vector.load %arg5[%c0_2, %c0_3] : memref<8x32xf32, #tpu.memory_space<vmem>>, vector<8x32xf32>
    %c0_4 = arith.constant 0 : index
    %c0_5 = arith.constant 0 : index
    %5 = vector.load %arg6[%c0_4, %c0_5] : memref<8x32xf32, #tpu.memory_space<vmem>>, vector<8x32xf32>
    %c0_i32_6 = arith.constant 0 : i32
    %6 = arith.index_cast %c0_i32_6 : i32 to index
    %c0_7 = arith.constant 0 : index
    %c0_8 = arith.constant 0 : index
    %7 = vector.load %arg2[%6, %c0_7, %c0_8] : memref<4x8x128xf32, #tpu.memory_space<vmem>>, vector<1x8x128xf32>
    %8 = vector.shape_cast %7 : vector<1x8x128xf32> to vector<8x128xf32>
    %cst = arith.constant dense<0.000000e+00> : vector<8x128xf32>
    %9 = tpu.matmul %4, %3, %cst {dimension_numbers = #tpu.dot_dimension_numbers<[1], [0], [0], [1], [0, 0, 1, 1], [], []>} : vector<8x32xf32>, vector<32x128xf32>, vector<8x128xf32> -> vector<8x128xf32>
    %10 = arith.addf %8, %9 : vector<8x128xf32>
    %11 = tpu.iota {dimensions = array<i32: 1>} : vector<8x128xi32>
    %c96_i32 = arith.constant 96 : i32
    %12 = vector.broadcast %c96_i32 : i32 to vector<8x128xi32>
    %13 = arith.cmpi sge, %11, %12 : vector<8x128xi32>
    %cst_9 = arith.constant 2.000000e+00 : f32
    %14 = vector.broadcast %cst_9 : f32 to vector<8x128xf32>
    %15 = arith.mulf %14, %10 : vector<8x128xf32>
    %16 = arith.select %13, %15, %10 : vector<8x128xi1>, vector<8x128xf32>
    %17 = arith.negf %16 : vector<8x128xf32>
    %18 = math.exp %17 : vector<8x128xf32>
    %cst_10 = arith.constant 1.000000e+00 : f32
    %19 = vector.broadcast %cst_10 : f32 to vector<8x128xf32>
    %20 = arith.addf %19, %18 : vector<8x128xf32>
    %21 = arith.divf %19, %20 : vector<8x128xf32>
    %cst_11 = arith.constant 2.000000e+00 : f32
    %22 = vector.broadcast %cst_11 : f32 to vector<8x128xf32>
    %23 = arith.mulf %22, %21 : vector<8x128xf32>
    %cst_12 = arith.constant 1.000000e+00 : f32
    %24 = vector.broadcast %cst_12 : f32 to vector<8x128xf32>
    %25 = arith.subf %23, %24 : vector<8x128xf32>
    %26 = arith.select %13, %25, %21 : vector<8x128xi1>, vector<8x128xf32>
    %27 = vector.extract_strided_slice %26 {offsets = [0, 0], sizes = [8, 32], strides = [1, 1]} : vector<8x128xf32> to vector<8x32xf32>
    %28 = vector.extract_strided_slice %26 {offsets = [0, 32], sizes = [8, 32], strides = [1, 1]} : vector<8x128xf32> to vector<8x32xf32>
    %29 = vector.extract_strided_slice %26 {offsets = [0, 64], sizes = [8, 32], strides = [1, 1]} : vector<8x128xf32> to vector<8x32xf32>
    %30 = vector.extract_strided_slice %26 {offsets = [0, 96], sizes = [8, 32], strides = [1, 1]} : vector<8x128xf32> to vector<8x32xf32>
    %31 = arith.mulf %28, %5 : vector<8x32xf32>
    %32 = arith.mulf %27, %30 : vector<8x32xf32>
    %33 = arith.addf %31, %32 : vector<8x32xf32>
    %34 = math.tanh %33 : vector<8x32xf32>
    %35 = arith.mulf %29, %34 : vector<8x32xf32>
    %c1_i32 = arith.constant 1 : i32
    %36 = arith.index_cast %c1_i32 : i32 to index
    %c0_13 = arith.constant 0 : index
    %c0_14 = arith.constant 0 : index
    %37 = vector.load %arg2[%36, %c0_13, %c0_14] : memref<4x8x128xf32, #tpu.memory_space<vmem>>, vector<1x8x128xf32>
    %38 = vector.shape_cast %37 : vector<1x8x128xf32> to vector<8x128xf32>
    %cst_15 = arith.constant dense<0.000000e+00> : vector<8x128xf32>
    %39 = tpu.matmul %35, %3, %cst_15 {dimension_numbers = #tpu.dot_dimension_numbers<[1], [0], [0], [1], [0, 0, 1, 1], [], []>} : vector<8x32xf32>, vector<32x128xf32>, vector<8x128xf32> -> vector<8x128xf32>
    %40 = arith.addf %38, %39 : vector<8x128xf32>
    %41 = tpu.iota {dimensions = array<i32: 1>} : vector<8x128xi32>
    %c96_i32_16 = arith.constant 96 : i32
    %42 = vector.broadcast %c96_i32_16 : i32 to vector<8x128xi32>
    %43 = arith.cmpi sge, %41, %42 : vector<8x128xi32>
    %cst_17 = arith.constant 2.000000e+00 : f32
    %44 = vector.broadcast %cst_17 : f32 to vector<8x128xf32>
    %45 = arith.mulf %44, %40 : vector<8x128xf32>
    %46 = arith.select %43, %45, %40 : vector<8x128xi1>, vector<8x128xf32>
    %47 = arith.negf %46 : vector<8x128xf32>
    %48 = math.exp %47 : vector<8x128xf32>
    %cst_18 = arith.constant 1.000000e+00 : f32
    %49 = vector.broadcast %cst_18 : f32 to vector<8x128xf32>
    %50 = arith.addf %49, %48 : vector<8x128xf32>
    %51 = arith.divf %49, %50 : vector<8x128xf32>
    %cst_19 = arith.constant 2.000000e+00 : f32
    %52 = vector.broadcast %cst_19 : f32 to vector<8x128xf32>
    %53 = arith.mulf %52, %51 : vector<8x128xf32>
    %cst_20 = arith.constant 1.000000e+00 : f32
    %54 = vector.broadcast %cst_20 : f32 to vector<8x128xf32>
    %55 = arith.subf %53, %54 : vector<8x128xf32>
    %56 = arith.select %43, %55, %51 : vector<8x128xi1>, vector<8x128xf32>
    %57 = vector.extract_strided_slice %56 {offsets = [0, 0], sizes = [8, 32], strides = [1, 1]} : vector<8x128xf32> to vector<8x32xf32>
    %58 = vector.extract_strided_slice %56 {offsets = [0, 32], sizes = [8, 32], strides = [1, 1]} : vector<8x128xf32> to vector<8x32xf32>
    %59 = vector.extract_strided_slice %56 {offsets = [0, 64], sizes = [8, 32], strides = [1, 1]} : vector<8x128xf32> to vector<8x32xf32>
    %60 = vector.extract_strided_slice %56 {offsets = [0, 96], sizes = [8, 32], strides = [1, 1]} : vector<8x128xf32> to vector<8x32xf32>
    %61 = arith.mulf %58, %33 : vector<8x32xf32>
    %62 = arith.mulf %57, %60 : vector<8x32xf32>
    %63 = arith.addf %61, %62 : vector<8x32xf32>
    %64 = math.tanh %63 : vector<8x32xf32>
    %65 = arith.mulf %59, %64 : vector<8x32xf32>
    %c2_i32 = arith.constant 2 : i32
    %66 = arith.index_cast %c2_i32 : i32 to index
    %c0_21 = arith.constant 0 : index
    %c0_22 = arith.constant 0 : index
    %67 = vector.load %arg2[%66, %c0_21, %c0_22] : memref<4x8x128xf32, #tpu.memory_space<vmem>>, vector<1x8x128xf32>
    %68 = vector.shape_cast %67 : vector<1x8x128xf32> to vector<8x128xf32>
    %cst_23 = arith.constant dense<0.000000e+00> : vector<8x128xf32>
    %69 = tpu.matmul %65, %3, %cst_23 {dimension_numbers = #tpu.dot_dimension_numbers<[1], [0], [0], [1], [0, 0, 1, 1], [], []>} : vector<8x32xf32>, vector<32x128xf32>, vector<8x128xf32> -> vector<8x128xf32>
    %70 = arith.addf %68, %69 : vector<8x128xf32>
    %71 = tpu.iota {dimensions = array<i32: 1>} : vector<8x128xi32>
    %c96_i32_24 = arith.constant 96 : i32
    %72 = vector.broadcast %c96_i32_24 : i32 to vector<8x128xi32>
    %73 = arith.cmpi sge, %71, %72 : vector<8x128xi32>
    %cst_25 = arith.constant 2.000000e+00 : f32
    %74 = vector.broadcast %cst_25 : f32 to vector<8x128xf32>
    %75 = arith.mulf %74, %70 : vector<8x128xf32>
    %76 = arith.select %73, %75, %70 : vector<8x128xi1>, vector<8x128xf32>
    %77 = arith.negf %76 : vector<8x128xf32>
    %78 = math.exp %77 : vector<8x128xf32>
    %cst_26 = arith.constant 1.000000e+00 : f32
    %79 = vector.broadcast %cst_26 : f32 to vector<8x128xf32>
    %80 = arith.addf %79, %78 : vector<8x128xf32>
    %81 = arith.divf %79, %80 : vector<8x128xf32>
    %cst_27 = arith.constant 2.000000e+00 : f32
    %82 = vector.broadcast %cst_27 : f32 to vector<8x128xf32>
    %83 = arith.mulf %82, %81 : vector<8x128xf32>
    %cst_28 = arith.constant 1.000000e+00 : f32
    %84 = vector.broadcast %cst_28 : f32 to vector<8x128xf32>
    %85 = arith.subf %83, %84 : vector<8x128xf32>
    %86 = arith.select %73, %85, %81 : vector<8x128xi1>, vector<8x128xf32>
    %87 = vector.extract_strided_slice %86 {offsets = [0, 0], sizes = [8, 32], strides = [1, 1]} : vector<8x128xf32> to vector<8x32xf32>
    %88 = vector.extract_strided_slice %86 {offsets = [0, 32], sizes = [8, 32], strides = [1, 1]} : vector<8x128xf32> to vector<8x32xf32>
    %89 = vector.extract_strided_slice %86 {offsets = [0, 64], sizes = [8, 32], strides = [1, 1]} : vector<8x128xf32> to vector<8x32xf32>
    %90 = vector.extract_strided_slice %86 {offsets = [0, 96], sizes = [8, 32], strides = [1, 1]} : vector<8x128xf32> to vector<8x32xf32>
    %91 = arith.mulf %88, %63 : vector<8x32xf32>
    %92 = arith.mulf %87, %90 : vector<8x32xf32>
    %93 = arith.addf %91, %92 : vector<8x32xf32>
    %94 = math.tanh %93 : vector<8x32xf32>
    %95 = arith.mulf %89, %94 : vector<8x32xf32>
    %c3_i32 = arith.constant 3 : i32
    %96 = arith.index_cast %c3_i32 : i32 to index
    %c0_29 = arith.constant 0 : index
    %c0_30 = arith.constant 0 : index
    %97 = vector.load %arg2[%96, %c0_29, %c0_30] : memref<4x8x128xf32, #tpu.memory_space<vmem>>, vector<1x8x128xf32>
    %98 = vector.shape_cast %97 : vector<1x8x128xf32> to vector<8x128xf32>
    %cst_31 = arith.constant dense<0.000000e+00> : vector<8x128xf32>
    %99 = tpu.matmul %95, %3, %cst_31 {dimension_numbers = #tpu.dot_dimension_numbers<[1], [0], [0], [1], [0, 0, 1, 1], [], []>} : vector<8x32xf32>, vector<32x128xf32>, vector<8x128xf32> -> vector<8x128xf32>
    %100 = arith.addf %98, %99 : vector<8x128xf32>
    %101 = tpu.iota {dimensions = array<i32: 1>} : vector<8x128xi32>
    %c96_i32_32 = arith.constant 96 : i32
    %102 = vector.broadcast %c96_i32_32 : i32 to vector<8x128xi32>
    %103 = arith.cmpi sge, %101, %102 : vector<8x128xi32>
    %cst_33 = arith.constant 2.000000e+00 : f32
    %104 = vector.broadcast %cst_33 : f32 to vector<8x128xf32>
    %105 = arith.mulf %104, %100 : vector<8x128xf32>
    %106 = arith.select %103, %105, %100 : vector<8x128xi1>, vector<8x128xf32>
    %107 = arith.negf %106 : vector<8x128xf32>
    %108 = math.exp %107 : vector<8x128xf32>
    %cst_34 = arith.constant 1.000000e+00 : f32
    %109 = vector.broadcast %cst_34 : f32 to vector<8x128xf32>
    %110 = arith.addf %109, %108 : vector<8x128xf32>
    %111 = arith.divf %109, %110 : vector<8x128xf32>
    %cst_35 = arith.constant 2.000000e+00 : f32
    %112 = vector.broadcast %cst_35 : f32 to vector<8x128xf32>
    %113 = arith.mulf %112, %111 : vector<8x128xf32>
    %cst_36 = arith.constant 1.000000e+00 : f32
    %114 = vector.broadcast %cst_36 : f32 to vector<8x128xf32>
    %115 = arith.subf %113, %114 : vector<8x128xf32>
    %116 = arith.select %103, %115, %111 : vector<8x128xi1>, vector<8x128xf32>
    %117 = vector.extract_strided_slice %116 {offsets = [0, 0], sizes = [8, 32], strides = [1, 1]} : vector<8x128xf32> to vector<8x32xf32>
    %118 = vector.extract_strided_slice %116 {offsets = [0, 32], sizes = [8, 32], strides = [1, 1]} : vector<8x128xf32> to vector<8x32xf32>
    %119 = vector.extract_strided_slice %116 {offsets = [0, 64], sizes = [8, 32], strides = [1, 1]} : vector<8x128xf32> to vector<8x32xf32>
    %120 = vector.extract_strided_slice %116 {offsets = [0, 96], sizes = [8, 32], strides = [1, 1]} : vector<8x128xf32> to vector<8x32xf32>
    %121 = arith.mulf %118, %93 : vector<8x32xf32>
    %122 = arith.mulf %117, %120 : vector<8x32xf32>
    %123 = arith.addf %121, %122 : vector<8x32xf32>
    %124 = math.tanh %123 : vector<8x32xf32>
    %125 = arith.mulf %119, %124 : vector<8x32xf32>
    %c4_i32 = arith.constant 4 : i32
    %c0_37 = arith.constant 0 : index
    %c0_38 = arith.constant 0 : index
    %126 = vector.load %arg5[%c0_37, %c0_38] : memref<8x32xf32, #tpu.memory_space<vmem>>, vector<8x32xf32>
    tpu.vector_store %arg5[%c0_37, %c0_38], %125 {strides = array<i32>} : memref<8x32xf32, #tpu.memory_space<vmem>>, vector<8x32xf32>,
    %c0_39 = arith.constant 0 : index
    %c0_40 = arith.constant 0 : index
    %127 = vector.load %arg6[%c0_39, %c0_40] : memref<8x32xf32, #tpu.memory_space<vmem>>, vector<8x32xf32>
    tpu.vector_store %arg6[%c0_39, %c0_40], %123 {strides = array<i32>} : memref<8x32xf32, #tpu.memory_space<vmem>>, vector<8x32xf32>,
    %c1_i32_41 = arith.constant 1 : i32
    %128 = arith.cmpi eq, %arg1, %c1_i32_41 : i32
    %129 = arith.extui %128 : i1 to i32
    %c0_i32_42 = arith.constant 0 : i32
    %130 = arith.cmpi ne, %129, %c0_i32_42 : i32
    scf.if %130 {
      %c0_43 = arith.constant 0 : index
      %c0_44 = arith.constant 0 : index
      %131 = vector.load %arg4[%c0_43, %c0_44] : memref<8x32xf32, #tpu.memory_space<vmem>>, vector<8x32xf32>
      tpu.vector_store %arg4[%c0_43, %c0_44], %125 {strides = array<i32>} : memref<8x32xf32, #tpu.memory_space<vmem>>, vector<8x32xf32>,
    } else {
    }
    return
  }
  func.func @transform_0(%arg0: i32, %arg1: i32) -> (i32, i32, i32) {
    %c0_i32 = arith.constant 0 : i32
    %c0_i32_0 = arith.constant 0 : i32
    return %arg1, %arg0, %c0_i32 : i32, i32, i32
  }
  func.func @transform_1(%arg0: i32, %arg1: i32) -> (i32, i32) {
    %c0_i32 = arith.constant 0 : i32
    %c0_i32_0 = arith.constant 0 : i32
    %c0_i32_1 = arith.constant 0 : i32
    return %c0_i32, %c0_i32_0 : i32, i32
  }
  func.func @transform_2(%arg0: i32, %arg1: i32) -> (i32, i32) {
    %c0_i32 = arith.constant 0 : i32
    %c0_i32_0 = arith.constant 0 : i32
    return %arg0, %c0_i32 : i32, i32
  }
}

</mosaic_0001>

<bundles_post_ra>
// kernel: lstm_forward.1
= control target key start
LH: loop header
LB: loop body
LE: loop exit
PB: predicated region body
PF: predicated region fallthrough
CT: control target
= control target key end

     0   :  { %s901_s9 = smov 0   ;;  %s903_s10 = smov 0   ;;  %s1012_s0 = inlined_call_operand.vmem [shape: f32[8,8,128], index: 0, kind: input, shape index: {}]   ;;  %s1013_s1 = inlined_call_operand.vmem [shape: f32[32,128], index: 1, kind: input, shape index: {}]   ;;  %s1014_s2 = inlined_call_operand.vmem [shape: f32[8,32], index: 2, kind: output, shape index: {}]  }
   0x1   :  { %s905_s11 = smov 0  }
   0x2 LB: > { %s21_s12 = sadd.s32 1, %s873_s10  ;;  %p689_p0 = scmp.ge.s32.totalorder %s877_s11, 1  ;;  %s877_s11 = sphi %s905_s11, %s12_s11   ;;  %s873_s10 = sphi %s903_s10, %s1016_s10   ;;  %s869_s9 = sphi %s901_s9, %s1015_s9  }
   0x3   : > { %p22_p1 = scmp.ge.s32.totalorder %s21_s12, 2  ;;  %p130_p2 = scmp.lt.s32.totalorder %s877_s11, 3 }
   0x5   : > { %s1018_s12 = smov (%p22_p1, %s21_s12), 0  ;;  %p131_p3 = pnand %p689_p0, %p130_p2 }
   0x6   : > { %s690_s13 = sshll.u32 (!%p131_p3), %s869_s9, 2  ;;  %p692_p5 = scmp.ne.s32.totalorder (!%p131_p3), %s869_s9, 0 }
   0x7   : > { %134 = sbr.rel (%p131_p3) target bundleno = 2932 (0xb74), region = 28  ;;  %p155_p4 = scmp.lt.s32.totalorder (!%p131_p3), %s690_s13, 7 }
   0xe   : > { %s1020_s13 = smov (!%p155_p4, %s690_s13), 7  ;;  %170 = sbr.rel (%p692_p5) target bundleno = 21 (0x15), region = 32 }
   0xf   : > { %s691_s14 = sshll.u32 %s1020_s13, 3  ;;  %vm171_vm0 = vcmask (!%p692_p5), 261120   ;;  %v879_v0 = vmov (!%p692_p5), 0.0  }
  0x10   : > { %s925_s17 = scalar_lea.vmem %s1012_s0, %s691_s14  ;;  %172 = vst.msk [vmem:[#allocation2] sm:$0xff] (!%p692_p5), %vm171_vm0, %v879_v0  ;;  %173 = vst.msk [vmem:[#allocation3] sm:$0xff] (!%p692_p5), %vm171_vm0, %v879_v0 }
  0x15 PF: > { %v174_v1 = vld [vmem:[%s1013_s1] sm:$0xff]  ;;  %v175_v2 = vld [vmem:[%s1013_s1 + $0x8] sm:$0xff]  ;;  %v176_v3 = vld [vmem:[%s1013_s1 + $0x10] sm:$0xff]  ;;  %v880_v4 = vmov 0.0|0.0   ;;  %vm881_vm1 = vmmov 0   ;;  %v882_v7 = vmov 0.0   ;;  %v256_v10 = vlaneseq }
  0x16   : > { %776 = vmatprep.subr.bf16.mxu0 %v880_v4  ;;  %v777_v5 = vpack.c.bf16 %v175_v2, %v174_v1  ;;  %v177_v6 = vld [vmem:[%s1013_s1 + $0x18] sm:$0xff]  ;;  %740 = vmatprep.mubr.msk.f32.mxu0 %vm881_vm1, %v882_v7  ;;  %vm181_vm2 = vcmask 261120   ;;  %v180_v11 = vld [vmem:[%s925_s17] sm:$0xff]  ;;  %s883_s26 = smov 32   ;;  %s884_s27 = smov 64   ;;  %v696_v36 = vld [vmem:[%s925_s17 + $0x8] sm:$0xff] }
  0x17   : > { %782 = vmatprep.subr.bf16.mxu1 %v880_v4  ;;  %751 = vmatprep.mubr.msk.f32.mxu1 %vm881_vm1, %v882_v7  ;;  %v780_v8 = vpack.c.bf16 %v177_v6, %v176_v3  ;;  %v178_v9 = vld [vmem:[#allocation2] sm:$0xff]  ;;  %v952_v12 = vand.u32 127, %v256_v10  ;;  %v179_v25 = vld [vmem:[#allocation3] sm:$0xff]  ;;  %v700_v58 = vld [vmem:[%s925_s17 + $0x10] sm:$0xff]  ;;  %s885_s28 = smov 96   ;;  %p708_p6 = scmp.ne.s32.totalorder %s869_s9, 1 }
  0x18   : > { %778 = vmatpush3.bf16.msra.mxu0 %v777_v5  ;;  %784 = vmatpush3.bf16.msra.mxu1 %v777_v5 }
  0x19   : > { %779 = vmatprep.subr.bf16.mxu0 %v880_v4  ;;  %785 = vmatprep.subr.bf16.mxu1 %v880_v4  ;;  %vm258_vm3 = vcmp.ge.s32.totalorder %v952_v12, 96 }
  0x1c   : > { %781 = vmatpush3.bf16.msra.mxu0 %v780_v8  ;;  %787 = vmatpush3.bf16.msra.mxu1 %v780_v8 }
  0x1d   : > { %788 = vmatprep.subr.bf16.mxu0 %v880_v4  ;;  %794 = vmatprep.subr.bf16.mxu1 %v880_v4 }
  0x1f   : > { %741 = vmatmul.mubr.msk.f32.vlgmr.msra.gmra.mrb[0].mxu0 %vm181_vm2, %v178_v9 }
  0x20   : > { %790 = vmatpush3.bf16.msra.mxu0 %v777_v5  ;;  %762 = vmatprep.mubr.msk.f32.mxu0 %vm881_vm1, %v882_v7 }
  0x21   : > { %791 = vmatprep.subr.bf16.mxu0 %v880_v4 }
  0x24   : > { %793 = vmatpush3.bf16.msra.mxu0 %v780_v8 }
  0xf2   : > { %v251_v13 = vpop.f32.mrb[0].mxu0 }
  0xf3   : > { %v255_v14 = vadd.f32 %v251_v13, %v180_v11  ;;  %v742_v15 = vpop.f32.mrb[1].mxu0 }
  0xf5   : > { %v259_v16 = vmul.f32 2.0, %v255_v14 }
  0xf7   : > { %v260_v17 = vsel %vm258_vm3, %v259_v16, %v255_v14 }
  0xf8   : > { %v694_v18 = vmul.f32 -1.442695, %v260_v17  ;;  %v704_v17 = vld [vmem:[%s925_s17 + $0x18] sm:$0xff] }
  0xfa   : > { %831 = vpow2.f32 %v694_v18 }
 0x104   : > { %v832_v19 = vpop.eup %831 }
 0x105   : > { %v264_v20 = vadd.f32 1.0, %v832_v19 }
 0x107   : > { %833 = vrcp.f32 %v264_v20 }
 0x111   : > { %v834_v21 = vpop.eup %833 }
 0x112   : > { %v267_v22 = vmul.f32 2.0, %v834_v21 }
 0x114   : > { %v695_v23 = vadd.f32 -1.0, %v267_v22 }
 0x116   : > { %v269_v24 = vsel %vm258_vm3, %v695_v23, %v834_v21 }
 0x117   : > { %276 = vrot.lane.b32.xlu0 %v269_v24, %s883_s26 }
 0x11b   : > { %271 = vrot.lane.b32.xlu0 %v179_v25, %s883_s26 }
 0x189   : > { %v277_v26 = vpop.permute.xlu0 %276 }
 0x18a   : > { %v279_v27 = vmul.f32 %v277_v26, %v269_v24 }
 0x18c   : > { %281 = vrot.lane.b32.xlu1 %v279_v27, %s883_s26 }
 0x18d   : > { %v272_v28 = vpop.permute.xlu0 %271 }
 0x18e   : > { %v274_v29 = vmul.f32 %v272_v28, %v269_v24 }
 0x1fe   : > { %v282_v30 = vpop.permute.xlu1 %281 }
 0x1ff   : > { %v284_v31 = vadd.f32 %v282_v30, %v274_v29 }
 0x201   : > { %835 = vtanh.f32 %v284_v31 }
 0x20b   : > { %v836_v32 = vpop.eup %835 }
 0x20c   : > { %287 = vrot.lane.b32.xlu1 %v836_v32, %s883_s26 }
 0x27e   : > { %v288_v33 = vpop.permute.xlu1 %287 }
 0x27f   : > { %v290_v34 = vmul.f32 %v288_v33, %v269_v24 }
 0x281   : > { %294 = vrot.lane.b32.xlu0 %v290_v34, %s884_s27 }
 0x2f3   : > { %v295_v35 = vpop.permute.xlu0 %294 }
 0x2f4   : > { %752 = vmatmul.mubr.msk.f32.vlgmr.msra.gmra.mrb[0].mxu1 %vm181_vm2, %v295_v35 }
 0x2f5   : > { %796 = vmatpush3.bf16.msra.mxu1 %v777_v5  ;;  %773 = vmatprep.mubr.msk.f32.mxu1 %vm881_vm1, %v882_v7 }
 0x2f6   : > { %797 = vmatprep.subr.bf16.mxu1 %v880_v4 }
 0x2f9   : > { %799 = vmatpush3.bf16.msra.mxu1 %v780_v8 }
 0x3c7   : > { %v364_v37 = vpop.f32.mrb[0].mxu1 }
 0x3c8   : > { %v368_v38 = vadd.f32 %v696_v36, %v364_v37  ;;  %v753_v39 = vpop.f32.mrb[1].mxu1 }
 0x3ca   : > { %v369_v40 = vmul.f32 2.0, %v368_v38 }
 0x3cc   : > { %v370_v41 = vsel %vm258_vm3, %v369_v40, %v368_v38 }
 0x3cd   : > { %v698_v42 = vmul.f32 -1.442695, %v370_v41 }
 0x3cf   : > { %837 = vpow2.f32 %v698_v42 }
 0x3d9   : > { %v838_v43 = vpop.eup %837 }
 0x3da   : > { %v374_v44 = vadd.f32 1.0, %v838_v43 }
 0x3dc   : > { %839 = vrcp.f32 %v374_v44 }
 0x3e6   : > { %v840_v45 = vpop.eup %839 }
 0x3e7   : > { %v377_v46 = vmul.f32 2.0, %v840_v45 }
 0x3e9   : > { %v699_v47 = vadd.f32 -1.0, %v377_v46 }
 0x3eb   : > { %v379_v48 = vsel %vm258_vm3, %v699_v47, %v840_v45 }
 0x3ec   : > { %382 = vrot.lane.b32.xlu1 %v379_v48, %s883_s26  ;;  %v380_v51 = vmul.f32 %v379_v48, %v284_v31 }
 0x45e   : > { %v383_v49 = vpop.permute.xlu1 %382 }
 0x45f   : > { %v385_v50 = vmul.f32 %v383_v49, %v379_v48 }
 0x461   : > { %387 = vrot.lane.b32.xlu0 %v385_v50, %s883_s26 }
 0x4d3   : > { %v388_v52 = vpop.permute.xlu0 %387 }
 0x4d4   : > { %v390_v53 = vadd.f32 %v388_v52, %v380_v51 }
 0x4d6   : > { %841 = vtanh.f32 %v390_v53 }
 0x4e0   : > { %v842_v54 = vpop.eup %841 }
 0x4e1   : > { %393 = vrot.lane.b32.xlu1 %v842_v54, %s883_s26 }
 0x553   : > { %v394_v55 = vpop.permute.xlu1 %393 }
 0x554   : > { %v396_v56 = vmul.f32 %v394_v55, %v379_v48 }
 0x556   : > { %400 = vrot.lane.b32.xlu0 %v396_v56, %s884_s27 }
 0x5c8   : > { %v401_v57 = vpop.permute.xlu0 %400 }
 0x5c9   : > { %763 = vmatmul.mubr.msk.f32.vlgmr.msra.gmra.mrb[2].mxu0 %vm181_vm2, %v401_v57 }
 0x69c   : > { %v470_v59 = vpop.f32.mrb[2].mxu0 }
 0x69d   : > { %v474_v60 = vadd.f32 %v700_v58, %v470_v59  ;;  %v764_v61 = vpop.f32.mrb[3].mxu0 }
 0x69f   : > { %v475_v62 = vmul.f32 2.0, %v474_v60 }
 0x6a1   : > { %v476_v63 = vsel %vm258_vm3, %v475_v62, %v474_v60 }
 0x6a2   : > { %v702_v0 = vmul.f32 -1.442695, %v476_v63 }
 0x6a4   : > { %843 = vpow2.f32 %v702_v0 }
 0x6ae   : > { %v844_v1 = vpop.eup %843 }
 0x6af   : > { %v480_v2 = vadd.f32 1.0, %v844_v1 }
 0x6b1   : > { %845 = vrcp.f32 %v480_v2 }
 0x6bb   : > { %v846_v3 = vpop.eup %845 }
 0x6bc   : > { %v483_v4 = vmul.f32 2.0, %v846_v3 }
 0x6be   : > { %v703_v5 = vadd.f32 -1.0, %v483_v4 }
 0x6c0   : > { %v485_v6 = vsel %vm258_vm3, %v703_v5, %v846_v3 }
 0x6c1   : > { %488 = vrot.lane.b32.xlu1 %v485_v6, %s883_s26  ;;  %v486_v9 = vmul.f32 %v485_v6, %v390_v53 }
 0x733   : > { %v489_v7 = vpop.permute.xlu1 %488 }
 0x734   : > { %v491_v8 = vmul.f32 %v489_v7, %v485_v6 }
 0x736   : > { %493 = vrot.lane.b32.xlu0 %v491_v8, %s883_s26 }
 0x7a8   : > { %v494_v10 = vpop.permute.xlu0 %493 }
 0x7a9   : > { %v496_v11 = vadd.f32 %v494_v10, %v486_v9 }
 0x7ab   : > { %847 = vtanh.f32 %v496_v11 }
 0x7b5   : > { %v848_v13 = vpop.eup %847 }
 0x7b6   : > { %499 = vrot.lane.b32.xlu1 %v848_v13, %s883_s26 }
 0x828   : > { %v500_v14 = vpop.permute.xlu1 %499 }
 0x829   : > { %v502_v15 = vmul.f32 %v500_v14, %v485_v6 }
 0x82b   : > { %506 = vrot.lane.b32.xlu0 %v502_v15, %s884_s27 }
 0x89d   : > { %v507_v16 = vpop.permute.xlu0 %506 }
 0x89e   : > { %774 = vmatmul.mubr.msk.f32.vlgmr.msra.gmra.mrb[2].mxu1 %vm181_vm2, %v507_v16 }
 0x971   : > { %v576_v18 = vpop.f32.mrb[2].mxu1 }
 0x972   : > { %v580_v19 = vadd.f32 %v704_v17, %v576_v18  ;;  %v775_v20 = vpop.f32.mrb[3].mxu1 }
 0x974   : > { %v581_v21 = vmul.f32 2.0, %v580_v19 }
 0x976   : > { %v582_v22 = vsel %vm258_vm3, %v581_v21, %v580_v19 }
 0x977   : > { %v706_v23 = vmul.f32 -1.442695, %v582_v22 }
 0x979   : > { %849 = vpow2.f32 %v706_v23 }
 0x983   : > { %v850_v24 = vpop.eup %849 }
 0x984   : > { %v586_v25 = vadd.f32 1.0, %v850_v24 }
 0x986   : > { %851 = vrcp.f32 %v586_v25 }
 0x990   : > { %v852_v26 = vpop.eup %851 }
 0x991   : > { %v589_v27 = vmul.f32 2.0, %v852_v26 }
 0x993   : > { %v707_v28 = vadd.f32 -1.0, %v589_v27 }
 0x995   : > { %v591_v29 = vsel %vm258_vm3, %v707_v28, %v852_v26 }
 0x996   : > { %594 = vrot.lane.b32.xlu1 %v591_v29, %s883_s26  ;;  %v592_v32 = vmul.f32 %v591_v29, %v496_v11 }
 0xa08   : > { %v595_v30 = vpop.permute.xlu1 %594 }
 0xa09   : > { %v597_v31 = vmul.f32 %v595_v30, %v591_v29 }
 0xa0b   : > { %599 = vrot.lane.b32.xlu0 %v597_v31, %s883_s26 }
 0xa7d   : > { %v600_v33 = vpop.permute.xlu0 %599 }
 0xa7e   : > { %v602_v34 = vadd.f32 %v600_v33, %v592_v32 }
 0xa80   : > { %853 = vtanh.f32 %v602_v34 }
 0xa8a   : > { %v854_v35 = vpop.eup %853 }
 0xa8b   : > { %605 = vrot.lane.b32.xlu1 %v854_v35, %s883_s26 }
 0xa8f   : > { %615 = vrot.lane.b32.xlu1 %v602_v34, %s885_s28 }
 0xafd   : > { %v606_v36 = vpop.permute.xlu1 %605 }
 0xafe   : > { %v608_v37 = vmul.f32 %v606_v36, %v591_v29 }
 0xb00   : > { %610 = vrot.lane.b32.xlu0 %v608_v37, %s884_s27 }
 0xb01   : > { %v616_v12 = vpop.permute.xlu1 %615 }
 0xb02   : > { %618 = vst.msk [vmem:[#allocation3] sm:$0xff] %vm181_vm2, %v616_v12 }
 0xb6d   : > { %622 = sbr.rel (%p708_p6) target bundleno = 2932 (0xb74), region = 36 }
 0xb72   : > { %v611_v38 = vpop.permute.xlu0 %610 }
 0xb73   : > { %613 = vst.msk [vmem:[#allocation2] sm:$0xff] %vm181_vm2, %v611_v38  ;;  %623 = vst.msk [vmem:[%s1014_s2] sm:$0xff] (!%p708_p6), %vm181_vm2, %v611_v38 }
 0xb74 PF: > { %s12_s11 = sadd.s32 1, %s877_s11   ;;  %s1015_s9 = smov %s873_s10 }
 0xb75   : > { %p9_p7 = scmp.ge.s32.totalorder %s12_s11, 4   ;;  %s1016_s10 = smov %s1018_s12 }
 0xb77   :  { %11 = sbr.rel (!%p9_p7) target bundleno = 2 (0x2), region = 69 }

</bundles_post_ra>
